<compile_context>
chip_gen: v6e
topology: v6e:2x2x1
jax: 0.10.0
libtpu: 0.0.40
codegen_flags: <defaults>
</compile_context>

<pallas_src>
import functools

import jax
import jax.numpy as jnp
from jax.experimental import pallas as pl
from jax.experimental.pallas import tpu as pltpu

LANES = 128  # every feature dim is zero-padded to a full 128-lane width


# --------------------------------------------------------------------------------------
# Kernel
# --------------------------------------------------------------------------------------
def graphrec_kernel(x_ref, w1_ref, w2_ref, w3_ref, w4_ref, b_ref, out_ref):
    """One batch tile: x (TB, 2D) bf16  ->  scores (TB, 128) f32 (cols >= 5 are zero pad)."""
    b = b_ref[...]                                   # (8, 128) f32; rows 0..3 used

    x = x_ref[...]                                   # (TB, 2D) bf16 (cast on host)

    # layer 1: blockdiag(w_ur1, w_vr1), BN1/BN2 folded, ReLU  (dropout = identity)
    h = jnp.dot(x, w1_ref[...], preferred_element_type=jnp.float32)
    h = jnp.maximum(h + b[0:1, :], 0.0)

    # layer 2: blockdiag(w_ur2, w_vr2) folded into w_uv1, BN3 folded, ReLU
    h = jnp.dot(h.astype(jnp.bfloat16), w2_ref[...], preferred_element_type=jnp.float32)
    h = jnp.maximum(h + b[1:2, :], 0.0)

    # layer 3: w_uv2, BN4 folded, ReLU
    h = jnp.dot(h.astype(jnp.bfloat16), w3_ref[...], preferred_element_type=jnp.float32)
    h = jnp.maximum(h + b[2:3, :], 0.0)

    # layer 4: w_uv3 (5 real output cols, zero-padded to 128 -> lane-dense store)
    h = jnp.dot(h.astype(jnp.bfloat16), w4_ref[...], preferred_element_type=jnp.float32)
    out_ref[...] = h + b[3:4, :]


# --------------------------------------------------------------------------------------
# Wrapper
# --------------------------------------------------------------------------------------
def _round_up(x, m):
    return ((x + m - 1) // m) * m


@functools.partial(jax.jit, static_argnames=("block_b",))
def graphrec_forward(embeds_u, embeds_v, folded, *, block_b=None):
    """embeds_u / embeds_v: (B, D) float32.  Returns (B, 5) float32 scores."""
    # concat + bf16 cast on host (fused with the gathers under jit): halves the
    # dominant streamed-input HBM traffic vs shipping f32 into the kernel.
    x = jnp.concatenate([embeds_u, embeds_v], axis=1).astype(jnp.bfloat16)  # (B, 2D)
    B, K = x.shape

    if block_b is None:
        # Largest useful tile (multiple of 16 for bf16 sublane packing), capped so
        # double-buffered (TB, 2D) bf16 + (TB, 128) f32 tiles stay far inside even
        # v5e's 16 MiB default scoped VMEM (and v7x's 64 MiB physical VMEM).
        tb = min(1024, _round_up(B, 16))
    else:
        tb = _round_up(block_b, 16)
    b_pad = _round_up(B, tb)
    if b_pad != B:
        x = jnp.pad(x, ((0, b_pad - B), (0, 0)))

    grid = (pl.cdiv(b_pad, tb),)

    def resident(arr):  # weights/biases: same block every grid step -> stay in VMEM
        return pl.BlockSpec(arr.shape, lambda i: (0, 0))

    out = pl.pallas_call(
        graphrec_kernel,
        out_shape=jax.ShapeDtypeStruct((b_pad, LANES), jnp.float32),
        grid=grid,
        in_specs=[
            pl.BlockSpec((tb, K), lambda i: (i, 0)),   # batch-tiled activations
            resident(folded["w1"]),
            resident(folded["w2"]),
            resident(folded["w3"]),
            resident(folded["w4"]),
            resident(folded["biases"]),
        ],
        out_specs=pl.BlockSpec((tb, LANES), lambda i: (i, 0)),
        compiler_params=pltpu.CompilerParams(
            # batch axis is independent -> shards across the 2 TensorCores on v7x,
            # harmless no-op on single-TC v5e/v6e.
            dimension_semantics=("parallel",),
        ),
    )(x, folded["w1"], folded["w2"], folded["w3"], folded["w4"], folded["biases"])
    return out[:B, :5]


# --------------------------------------------------------------------------------------
# Parameter construction (PyTorch-equivalent) and host-side folding / packing
# --------------------------------------------------------------------------------------
def _linear_params(key, fan_in, fan_out):
    """Mimic nn.Linear init: U(-1/sqrt(fan_in), 1/sqrt(fan_in)). W stored (in, out)."""
    kw, kb = jax.random.split(key)
    bound = 1.0 / jnp.sqrt(fan_in)
    w = jax.random.uniform(kw, (fan_in, fan_out), jnp.float32, -bound, bound)
    b = jax.random.uniform(kb, (1, fan_out), jnp.float32, -bound, bound)
    return w, b


def _bn_affine(key, dim, eps=1e-5):
    """Deterministic (non-trivial) eval-mode BatchNorm1d folded to scale/shift."""
    k1, k2, k3, k4 = jax.random.split(key, 4)
    gamma = 1.0 + 0.1 * jax.random.normal(k1, (1, dim), jnp.float32)
    beta = 0.1 * jax.random.normal(k2, (1, dim), jnp.float32)
    running_mean = 0.1 * jax.random.normal(k3, (1, dim), jnp.float32)
    running_var = 1.0 + 0.1 * jax.random.uniform(k4, (1, dim), jnp.float32)
    scale = gamma / jnp.sqrt(running_var + eps)
    shift = beta - running_mean * scale
    return scale, shift


def make_params(key, embed_dim):
    ks = jax.random.split(key, 11)
    p = {}
    p["w_ur1"], p["b_ur1"] = _linear_params(ks[0], embed_dim, embed_dim)
    p["w_ur2"], p["b_ur2"] = _linear_params(ks[1], embed_dim, embed_dim)
    p["w_vr1"], p["b_vr1"] = _linear_params(ks[2], embed_dim, embed_dim)
    p["w_vr2"], p["b_vr2"] = _linear_params(ks[3], embed_dim, embed_dim)
    p["w_uv1"], p["b_uv1"] = _linear_params(ks[4], 2 * embed_dim, embed_dim)
    p["w_uv2"], p["b_uv2"] = _linear_params(ks[5], embed_dim, 16)
    p["w_uv3"], p["b_uv3"] = _linear_params(ks[6], 16, 5)
    p["bn1_scale"], p["bn1_shift"] = _bn_affine(ks[7], embed_dim)
    p["bn2_scale"], p["bn2_shift"] = _bn_affine(ks[8], embed_dim)
    p["bn3_scale"], p["bn3_shift"] = _bn_affine(ks[9], embed_dim)
    p["bn4_scale"], p["bn4_shift"] = _bn_affine(ks[10], 16)
    return p


def fold_and_pack(p, embed_dim):
    """Fold eval-mode BN + branch/head structure into 4 padded bf16 matrices and one
    (8, 128) f32 packed-bias tensor (exactly the eval-mode math of the PyTorch model)."""
    D = embed_dim
    D2 = 2 * D
    f32 = jnp.float32

    # layer 1: blockdiag(w_ur1, w_vr1) with BN1/BN2 folded
    w1 = jnp.zeros((D2, LANES), f32)
    w1 = w1.at[:D, :D].set(p["w_ur1"] * p["bn1_scale"])
    w1 = w1.at[D:, D:D2].set(p["w_vr1"] * p["bn2_scale"])
    b1 = jnp.zeros((LANES,), f32)
    b1 = b1.at[:D].set((p["b_ur1"] * p["bn1_scale"] + p["bn1_shift"])[0])
    b1 = b1.at[D:D2].set((p["b_vr1"] * p["bn2_scale"] + p["bn2_shift"])[0])

    # layer 2: blockdiag(w_ur2, w_vr2) @ w_uv1 (no nonlinearity in between), BN3 folded
    w2_blk = jnp.zeros((D2, D2), f32)
    w2_blk = w2_blk.at[:D, :D].set(p["w_ur2"])
    w2_blk = w2_blk.at[D:, D:].set(p["w_vr2"])
    w_mid = (w2_blk @ p["w_uv1"]) * p["bn3_scale"]                        # (2D, D)
    b_mid = (jnp.concatenate([p["b_ur2"], p["b_vr2"]], axis=1) @ p["w_uv1"]
             + p["b_uv1"]) * p["bn3_scale"] + p["bn3_shift"]              # (1, D)
    w2 = jnp.zeros((LANES, LANES), f32).at[:D2, :D].set(w_mid)
    b2 = jnp.zeros((LANES,), f32).at[:D].set(b_mid[0])

    # layer 3: w_uv2 with BN4 folded
    w3 = jnp.zeros((LANES, LANES), f32).at[:D, :16].set(p["w_uv2"] * p["bn4_scale"])
    b3 = jnp.zeros((LANES,), f32).at[:16].set(
        (p["b_uv2"] * p["bn4_scale"] + p["bn4_shift"])[0])

    # layer 4: w_uv3, zero-padded 5 -> 128 output lanes (lane-dense store)
    w4 = jnp.zeros((LANES, LANES), f32).at[:16, :5].set(p["w_uv3"])
    b4 = jnp.zeros((LANES,), f32).at[:5].set(p["b_uv3"][0])

    biases = jnp.zeros((8, LANES), f32)
    biases = biases.at[0].set(b1).at[1].set(b2).at[2].set(b3).at[3].set(b4)

    return {
        "w1": w1.astype(jnp.bfloat16),
        "w2": w2.astype(jnp.bfloat16),
        "w3": w3.astype(jnp.bfloat16),
        "w4": w4.astype(jnp.bfloat16),
        "biases": biases,                 # f32 epilogue constants
    }


# --------------------------------------------------------------------------------------
# Pure-JAX f32 reference of the original eval-mode forward (dropout = identity)
# --------------------------------------------------------------------------------------
def reference_forward(embeds_u, embeds_v, p):
    relu = lambda t: jnp.maximum(t, 0.0)
    x_u = relu((embeds_u @ p["w_ur1"] + p["b_ur1"]) * p["bn1_scale"] + p["bn1_shift"])
    x_u = x_u @ p["w_ur2"] + p["b_ur2"]
    x_v = relu((embeds_v @ p["w_vr1"] + p["b_vr1"]) * p["bn2_scale"] + p["bn2_shift"])
    x_v = x_v @ p["w_vr2"] + p["b_vr2"]
    x = jnp.concatenate([x_u, x_v], axis=1)
    x = relu((x @ p["w_uv1"] + p["b_uv1"]) * p["bn3_scale"] + p["bn3_shift"])
    x = relu((x @ p["w_uv2"] + p["b_uv2"]) * p["bn4_scale"] + p["bn4_shift"])
    return x @ p["w_uv3"] + p["b_uv3"]


# --------------------------------------------------------------------------------------
if __name__ == "__main__":
    key = jax.random.PRNGKey(0)
    k_params, k_u_emb, k_v_emb, k_nodes_u, k_nodes_v = jax.random.split(key, 5)

    embed_dim = 32
    batch = 8
    num_users, num_items = 64, 64

    params = make_params(k_params, embed_dim)
    folded = fold_and_pack(params, embed_dim)

    # enc_u / enc_v_history modeled as embedding lookups (plain-JAX glue).
    user_table = jax.random.normal(k_u_emb, (num_users, embed_dim), jnp.float32)
    item_table = jax.random.normal(k_v_emb, (num_items, embed_dim), jnp.float32)
    nodes_u = jax.random.randint(k_nodes_u, (batch,), 0, num_users)
    nodes_v = jax.random.randint(k_nodes_v, (batch,), 0, num_items)
    embeds_u = jnp.take(user_table, nodes_u, axis=0)
    embeds_v = jnp.take(item_table, nodes_v, axis=0)

    scores = graphrec_forward(embeds_u, embeds_v, folded)
    scores = jax.block_until_ready(scores)
    ref = reference_forward(embeds_u, embeds_v, params)
    assert scores.shape == (batch, 5)
    assert jnp.allclose(scores, ref, atol=5e-2, rtol=5e-2), "mismatch vs f32 reference"

    # Second run exercising the batch grid (tiling + batch padding + parallel axis).
    batch2 = 300
    ku2, kv2 = jax.random.split(jax.random.PRNGKey(1))
    eu2 = jax.random.normal(ku2, (batch2, embed_dim), jnp.float32)
    ev2 = jax.random.normal(kv2, (batch2, embed_dim), jnp.float32)
    scores2 = jax.block_until_ready(graphrec_forward(eu2, ev2, folded, block_b=128))
    ref2 = reference_forward(eu2, ev2, params)
    assert scores2.shape == (batch2, 5)
    assert jnp.allclose(scores2, ref2, atol=5e-2, rtol=5e-2), "mismatch vs f32 reference (grid)"

    print("KERNEL_OK")
</pallas_src>

<mosaic_0001>
module attributes {stable_mosaic.version = 11 : i64} {
  func.func @graphrec_kernel(%arg0: i32, %arg1: memref<16x64xbf16, #tpu.memory_space<vmem>>, %arg2: memref<64x128xbf16, #tpu.memory_space<vmem>>, %arg3: memref<128x128xbf16, #tpu.memory_space<vmem>>, %arg4: memref<128x128xbf16, #tpu.memory_space<vmem>>, %arg5: memref<128x128xbf16, #tpu.memory_space<vmem>>, %arg6: memref<8x128xf32, #tpu.memory_space<vmem>>, %arg7: memref<16x128xf32, #tpu.memory_space<vmem>>) attributes {dimension_semantics = [#tpu.dimension_semantics<parallel>], iteration_bounds = array<i64: 1>, scalar_prefetch = 0 : i64, scratch_operands = 0 : i64, tpu.core_type = #tpu.core_type<tc>, window_params = [{transform_indices = @transform_0, window_bounds = array<i64: 16, 64>}, {pipeline_mode = #tpu.pipeline_mode<synchronous>, transform_indices = @transform_1, window_bounds = array<i64: 64, 128>}, {pipeline_mode = #tpu.pipeline_mode<synchronous>, transform_indices = @transform_2, window_bounds = array<i64: 128, 128>}, {pipeline_mode = #tpu.pipeline_mode<synchronous>, transform_indices = @transform_3, window_bounds = array<i64: 128, 128>}, {pipeline_mode = #tpu.pipeline_mode<synchronous>, transform_indices = @transform_4, window_bounds = array<i64: 128, 128>}, {pipeline_mode = #tpu.pipeline_mode<synchronous>, transform_indices = @transform_5, window_bounds = array<i64: 8, 128>}, {transform_indices = @transform_6, window_bounds = array<i64: 16, 128>}]} {
    %c0 = arith.constant 0 : index
    %c0_0 = arith.constant 0 : index
    %0 = vector.load %arg6[%c0, %c0_0] : memref<8x128xf32, #tpu.memory_space<vmem>>, vector<8x128xf32>
    %c0_1 = arith.constant 0 : index
    %c0_2 = arith.constant 0 : index
    %1 = vector.load %arg1[%c0_1, %c0_2] : memref<16x64xbf16, #tpu.memory_space<vmem>>, vector<16x64xbf16>
    %c0_3 = arith.constant 0 : index
    %c0_4 = arith.constant 0 : index
    %2 = vector.load %arg2[%c0_3, %c0_4] : memref<64x128xbf16, #tpu.memory_space<vmem>>, vector<64x128xbf16>
    %cst = arith.constant dense<0.000000e+00> : vector<16x128xf32>
    %3 = tpu.matmul %1, %2, %cst {dimension_numbers = #tpu.dot_dimension_numbers<[1], [0], [0], [1], [0, 0, 1, 1], [], []>} : vector<16x64xbf16>, vector<64x128xbf16>, vector<16x128xf32> -> vector<16x128xf32>
    %4 = vector.extract_strided_slice %0 {offsets = [0, 0], sizes = [1, 128], strides = [1, 1]} : vector<8x128xf32> to vector<1x128xf32>
    %5 = vector.broadcast %4 : vector<1x128xf32> to vector<16x128xf32>
    %6 = arith.addf %3, %5 : vector<16x128xf32>
    %cst_5 = arith.constant 0.000000e+00 : f32
    %7 = vector.broadcast %cst_5 : f32 to vector<16x128xf32>
    %8 = arith.maximumf %6, %7 : vector<16x128xf32>
    %9 = arith.truncf %8 : vector<16x128xf32> to vector<16x128xbf16>
    %c0_6 = arith.constant 0 : index
    %c0_7 = arith.constant 0 : index
    %10 = vector.load %arg3[%c0_6, %c0_7] : memref<128x128xbf16, #tpu.memory_space<vmem>>, vector<128x128xbf16>
    %cst_8 = arith.constant dense<0.000000e+00> : vector<16x128xf32>
    %11 = tpu.matmul %9, %10, %cst_8 {dimension_numbers = #tpu.dot_dimension_numbers<[1], [0], [0], [1], [0, 0, 1, 1], [], []>} : vector<16x128xbf16>, vector<128x128xbf16>, vector<16x128xf32> -> vector<16x128xf32>
    %12 = vector.extract_strided_slice %0 {offsets = [1, 0], sizes = [1, 128], strides = [1, 1]} : vector<8x128xf32> to vector<1x128xf32>
    %13 = vector.broadcast %12 : vector<1x128xf32> to vector<16x128xf32>
    %14 = arith.addf %11, %13 : vector<16x128xf32>
    %cst_9 = arith.constant 0.000000e+00 : f32
    %15 = vector.broadcast %cst_9 : f32 to vector<16x128xf32>
    %16 = arith.maximumf %14, %15 : vector<16x128xf32>
    %17 = arith.truncf %16 : vector<16x128xf32> to vector<16x128xbf16>
    %c0_10 = arith.constant 0 : index
    %c0_11 = arith.constant 0 : index
    %18 = vector.load %arg4[%c0_10, %c0_11] : memref<128x128xbf16, #tpu.memory_space<vmem>>, vector<128x128xbf16>
    %cst_12 = arith.constant dense<0.000000e+00> : vector<16x128xf32>
    %19 = tpu.matmul %17, %18, %cst_12 {dimension_numbers = #tpu.dot_dimension_numbers<[1], [0], [0], [1], [0, 0, 1, 1], [], []>} : vector<16x128xbf16>, vector<128x128xbf16>, vector<16x128xf32> -> vector<16x128xf32>
    %20 = vector.extract_strided_slice %0 {offsets = [2, 0], sizes = [1, 128], strides = [1, 1]} : vector<8x128xf32> to vector<1x128xf32>
    %21 = vector.broadcast %20 : vector<1x128xf32> to vector<16x128xf32>
    %22 = arith.addf %19, %21 : vector<16x128xf32>
    %cst_13 = arith.constant 0.000000e+00 : f32
    %23 = vector.broadcast %cst_13 : f32 to vector<16x128xf32>
    %24 = arith.maximumf %22, %23 : vector<16x128xf32>
    %25 = arith.truncf %24 : vector<16x128xf32> to vector<16x128xbf16>
    %c0_14 = arith.constant 0 : index
    %c0_15 = arith.constant 0 : index
    %26 = vector.load %arg5[%c0_14, %c0_15] : memref<128x128xbf16, #tpu.memory_space<vmem>>, vector<128x128xbf16>
    %cst_16 = arith.constant dense<0.000000e+00> : vector<16x128xf32>
    %27 = tpu.matmul %25, %26, %cst_16 {dimension_numbers = #tpu.dot_dimension_numbers<[1], [0], [0], [1], [0, 0, 1, 1], [], []>} : vector<16x128xbf16>, vector<128x128xbf16>, vector<16x128xf32> -> vector<16x128xf32>
    %28 = vector.extract_strided_slice %0 {offsets = [3, 0], sizes = [1, 128], strides = [1, 1]} : vector<8x128xf32> to vector<1x128xf32>
    %29 = vector.broadcast %28 : vector<1x128xf32> to vector<16x128xf32>
    %30 = arith.addf %27, %29 : vector<16x128xf32>
    %c0_17 = arith.constant 0 : index
    %c0_18 = arith.constant 0 : index
    %31 = vector.load %arg7[%c0_17, %c0_18] : memref<16x128xf32, #tpu.memory_space<vmem>>, vector<16x128xf32>
    tpu.vector_store %arg7[%c0_17, %c0_18], %30 {strides = array<i32>} : memref<16x128xf32, #tpu.memory_space<vmem>>, vector<16x128xf32>,
    return
  }
  func.func @transform_0(%arg0: i32) -> (i32, i32) {
    %c0_i32 = arith.constant 0 : i32
    %c0_i32_0 = arith.constant 0 : i32
    return %arg0, %c0_i32 : i32, i32
  }
  func.func @transform_1(%arg0: i32) -> (i32, i32) {
    %c0_i32 = arith.constant 0 : i32
    %c0_i32_0 = arith.constant 0 : i32
    %c0_i32_1 = arith.constant 0 : i32
    return %c0_i32, %c0_i32_0 : i32, i32
  }
  func.func @transform_2(%arg0: i32) -> (i32, i32) {
    %c0_i32 = arith.constant 0 : i32
    %c0_i32_0 = arith.constant 0 : i32
    %c0_i32_1 = arith.constant 0 : i32
    return %c0_i32, %c0_i32_0 : i32, i32
  }
  func.func @transform_3(%arg0: i32) -> (i32, i32) {
    %c0_i32 = arith.constant 0 : i32
    %c0_i32_0 = arith.constant 0 : i32
    %c0_i32_1 = arith.constant 0 : i32
    return %c0_i32, %c0_i32_0 : i32, i32
  }
  func.func @transform_4(%arg0: i32) -> (i32, i32) {
    %c0_i32 = arith.constant 0 : i32
    %c0_i32_0 = arith.constant 0 : i32
    %c0_i32_1 = arith.constant 0 : i32
    return %c0_i32, %c0_i32_0 : i32, i32
  }
  func.func @transform_5(%arg0: i32) -> (i32, i32) {
    %c0_i32 = arith.constant 0 : i32
    %c0_i32_0 = arith.constant 0 : i32
    %c0_i32_1 = arith.constant 0 : i32
    return %c0_i32, %c0_i32_0 : i32, i32
  }
  func.func @transform_6(%arg0: i32) -> (i32, i32) {
    %c0_i32 = arith.constant 0 : i32
    %c0_i32_0 = arith.constant 0 : i32
    return %arg0, %c0_i32 : i32, i32
  }
}

</mosaic_0001>

<bundles_post_ra>
// kernel: graphrec_forward.1
= control target key start
LH: loop header
LB: loop body
LE: loop exit
PB: predicated region body
PF: predicated region fallthrough
CT: control target
= control target key end

     0   :  { %11 = vsyncpa [#allocation3], 0  ;;  %s855_s0 = inlined_call_operand.vmem [shape: bf16[16,64], index: 0, kind: input, shape index: {}]   ;;  %s856_s1 = inlined_call_operand.vmem [shape: bf16[64,128], index: 1, kind: input, shape index: {}]   ;;  %s857_s2 = inlined_call_operand.hbm [shape: bf16[128,128], index: 2, kind: input, shape index: {}]   ;;  %s858_s3 = inlined_call_operand.hbm [shape: bf16[128,128], index: 3, kind: input, shape index: {}]   ;;  %s859_s4 = inlined_call_operand.hbm [shape: bf16[128,128], index: 4, kind: input, shape index: {}]   ;;  %s860_s5 = inlined_call_operand.vmem [shape: f32[8,128], index: 5, kind: input, shape index: {}]   ;;  %s861_s6 = inlined_call_operand.vmem [shape: f32[16,128], index: 6, kind: output, shape index: {}]  }
   0x1   :  { %12 = vsyncpa [#allocation5], 0  ;;  %s732_s21 = smov [#allocation4]   ;;  %s733_s23 = smov [#allocation2]  }
   0x2   :  { %s34_s22 = sshll.u32 %s732_s21, 4  ;;  %s22_s24 = sshll.u32 %s733_s23, 4  ;;  %s35_s22 = int_to_ptr.vmem [resolvable:$true] %s34_s22  ;;  %s23_s24 = int_to_ptr.vmem [resolvable:$true] %s22_s24 }
   0x3   :  { %s676_s25 = scalar_lea.vmem %s35_s22, 1024  ;;  %p681_p1 = scmp.lt.s32.totalorder %s35_s22, %s35_s22 }
   0x4   :  { %p677_p0 = scmp.ne.s32.totalorder %s35_s22, %s676_s25  ;;  %p682_p2 = scmp.lt.s32.totalorder %s676_s25, %s676_s25 }
   0x6   :  { %p683_p3 = por %p682_p2, %p681_p1 }
   0x8   :  { %p684_p4 = pnand %p683_p3, %p677_p0 }
   0xa   :  { %687 = shalt.err (!%p684_p4)
}
   0xb   :  { %s734_s26 = smov 64   ;;  %s735_s27 = smov 4  }
   0xc   :  { %40 = dma.hbm_to_vmem [thread:$0]  %s858_s3, 1024, %s35_s22, [#allocation5], %s734_s26, %s734_s26, %s735_s27  }
   0xd   :  { %s696_s30 = scalar_lea.vmem %s23_s24, 1024  ;;  %p701_p6 = scmp.lt.s32.totalorder %s23_s24, %s23_s24 }
   0xe   :  { %p697_p5 = scmp.ne.s32.totalorder %s23_s24, %s696_s30  ;;  %p702_p7 = scmp.lt.s32.totalorder %s696_s30, %s696_s30 }
  0x10   :  { %p703_p8 = por %p702_p7, %p701_p6 }
  0x12   :  { %p704_p9 = pnand %p703_p8, %p697_p5 }
  0x14   :  { %707 = shalt.err (!%p704_p9)
}
  0x15   :  { %28 = dma.hbm_to_vmem [thread:$0]  %s857_s2, 1024, %s23_s24, [#allocation3], %s734_s26, %s734_s26, %s735_s27  }
  0x16   :  { %s736_s9 = smov [#allocation6]  }
  0x17   :  { %s46_s10 = sshll.u32 %s736_s9, 4  ;;  %s47_s10 = int_to_ptr.vmem [resolvable:$true] %s46_s10 }
  0x18   :  { %s716_s11 = scalar_lea.vmem %s47_s10, 1024  ;;  %p721_p11 = scmp.lt.s32.totalorder %s47_s10, %s47_s10 }
  0x19   :  { %p717_p10 = scmp.ne.s32.totalorder %s47_s10, %s716_s11  ;;  %p722_p12 = scmp.lt.s32.totalorder %s716_s11, %s716_s11 }
  0x1b   :  { %p723_p13 = por %p722_p12, %p721_p11 }
  0x1d   :  { %p724_p0 = pnand %p723_p13, %p717_p10 }
  0x1f   :  { %727 = shalt.err (!%p724_p0)
}
  0x20   :  { %52 = dma.hbm_to_vmem [thread:$0]  %s859_s4, 1024, %s47_s10, [#allocation5], %s734_s26, %s734_s26, %s735_s27  }
  0x21   :  { %728 = dma.done.wait [#allocation3], 1024  }
  0x22   :  { %729 = vsyncadd [#allocation3], 4294966272 }
  0x23   :  { %730 = dma.done.wait [#allocation5], 2048  }
  0x24   :  { %731 = vsyncadd [#allocation5], 4294965248  ;;  %v737_v0 = vmov 0.0   ;;  %vm738_vm0 = vmmov 0   ;;  %v639_v1 = vld [vmem:[%s856_s1 + $0x18] sm:$0xff]   ;;  %v640_v2 = vld [vmem:[%s856_s1 + $0x10] sm:$0xff]   ;;  %v76_v19 = vlaneseq }
  0x25   :  { %560 = vmatprep.subr.bf16.mxu0 %v737_v0  ;;  %568 = vmatprep.mubr.msk.bf16.mxu0 %vm738_vm0, %v737_v0  ;;  %v644_v3 = vld [vmem:[#allocation2 + $0x38] sm:$0xff]   ;;  %v641_v4 = vld [vmem:[%s856_s1 + $0x8] sm:$0xff]   ;;  %v645_v5 = vld [vmem:[#allocation2 + $0x30] sm:$0xff]   ;;  %vm109_vm1 = vcmask 523264  }
  0x26   :  { %572 = vmatprep.subr.bf16.mxu1 %v737_v0  ;;  %588 = vmatprep.mubr.msk.bf16.mxu1 %vm738_vm0, %v737_v0  ;;  %v642_v6 = vld [vmem:[%s856_s1] sm:$0xff]   ;;  %v646_v7 = vld [vmem:[#allocation2 + $0x28] sm:$0xff]   ;;  %v648_v10 = vld [vmem:[#allocation2 + $0x18] sm:$0xff]   ;;  %v823_v20 = vshrl.u32 %v76_v19, 7 }
  0x27   :  { %561 = vmatpush3.bf16.msra.mxu0 %v639_v1  ;;  %573 = vmatpush3.bf16.msra.mxu1 %v644_v3  ;;  %v643_v8 = vld [vmem:[%s855_s0] sm:$0xff]   ;;  %v649_v11 = vld [vmem:[#allocation2 + $0x10] sm:$0xff]   ;;  %v650_v12 = vld [vmem:[#allocation2 + $0x8] sm:$0xff]  }
  0x28   :  { %562 = vmatprep.subr.bf16.mxu0 %v737_v0  ;;  %574 = vmatprep.subr.bf16.mxu1 %v737_v0  ;;  %v647_v9 = vld [vmem:[#allocation2 + $0x20] sm:$0xff]   ;;  %v652_v14 = vld [vmem:[#allocation4 + $0x38] sm:$0xff]   ;;  %v653_v15 = vld [vmem:[#allocation4 + $0x30] sm:$0xff]   ;;  %v78_v21 = vsub.s32 0, %v823_v20  ;;  %v175_v41 = vsub.s32 1, %v823_v20  ;;  %v287_v55 = vsub.s32 2, %v823_v20 }
  0x29   :  { %v651_v13 = vld [vmem:[#allocation2] sm:$0xff]   ;;  %v654_v16 = vld [vmem:[#allocation4 + $0x28] sm:$0xff]   ;;  %v656_v18 = vld [vmem:[#allocation4 + $0x18] sm:$0xff]   ;;  %v399_v3 = vsub.s32 3, %v823_v20 }
  0x2a   :  { %v655_v17 = vld [vmem:[#allocation4 + $0x20] sm:$0xff]   ;;  %v657_v33 = vld [vmem:[#allocation4 + $0x10] sm:$0xff]   ;;  %v658_v34 = vld [vmem:[#allocation4 + $0x8] sm:$0xff]  }
  0x2b   :  { %563 = vmatpush3.bf16.msra.mxu0 %v640_v2  ;;  %575 = vmatpush3.bf16.msra.mxu1 %v645_v5  ;;  %v829_v22 = vld [vmem:[%s860_s5] sm:$0xff]  ;;  %v660_v36 = vld [vmem:[#allocation6 + $0x38] sm:$0xff]   ;;  %v661_v37 = vld [vmem:[#allocation6 + $0x30] sm:$0xff]  }
  0x2c   :  { %564 = vmatprep.subr.bf16.mxu0 %v737_v0  ;;  %576 = vmatprep.subr.bf16.mxu1 %v737_v0  ;;  %v79_v23 = vrot.slane %v829_v22, %v78_v21  ;;  %v659_v35 = vld [vmem:[#allocation4] sm:$0xff]   ;;  %v662_v38 = vld [vmem:[#allocation6 + $0x28] sm:$0xff]   ;;  %v664_v40 = vld [vmem:[#allocation6 + $0x18] sm:$0xff]   ;;  %v176_v42 = vrot.slane %v829_v22, %v175_v41  ;;  %v288_v56 = vrot.slane %v829_v22, %v287_v55 }
  0x2d   :  { %v663_v39 = vld [vmem:[#allocation6 + $0x20] sm:$0xff]   ;;  %v665_v52 = vld [vmem:[#allocation6 + $0x10] sm:$0xff]   ;;  %v666_v53 = vld [vmem:[#allocation6 + $0x8] sm:$0xff]  }
  0x2e   :  { %v667_v54 = vld [vmem:[#allocation6] sm:$0xff]  }
  0x2f   :  { %565 = vmatpush3.bf16.msra.mxu0 %v641_v4  ;;  %577 = vmatpush3.bf16.msra.mxu1 %v646_v7 }
  0x30   :  { %566 = vmatprep.subr.bf16.mxu0 %v737_v0  ;;  %578 = vmatprep.subr.bf16.mxu1 %v737_v0 }
  0x33   :  { %567 = vmatpush3.bf16.msra.mxu0 %v642_v6  ;;  %579 = vmatpush3.bf16.msra.mxu1 %v647_v9 }
  0x34   :  { %592 = vmatprep.subr.bf16.mxu0 %v737_v0  ;;  %580 = vmatprep.subr.bf16.mxu1 %v737_v0 }
  0x36   :  { %569 = vmatmul.mubr.msk.bf16.vlgmr.msra.gmra.mxu0 %vm109_vm1, %v643_v8 }
  0x37   :  { %608 = vmatprep.mubr.msk.bf16.mxu0 %vm738_vm0, %v737_v0  ;;  %581 = vmatpush3.bf16.msra.mxu1 %v648_v10 }
  0x38   :  { %582 = vmatprep.subr.bf16.mxu1 %v737_v0  ;;  %593 = vmatpush3.bf16.msra.mxu0 %v652_v14 }
  0x39   :  { %594 = vmatprep.subr.bf16.mxu0 %v737_v0 }
  0x3b   :  { %583 = vmatpush3.bf16.msra.mxu1 %v649_v11 }
  0x3c   :  { %584 = vmatprep.subr.bf16.mxu1 %v737_v0  ;;  %595 = vmatpush3.bf16.msra.mxu0 %v653_v15 }
  0x3d   :  { %596 = vmatprep.subr.bf16.mxu0 %v737_v0 }
  0x3f   :  { %585 = vmatpush3.bf16.msra.mxu1 %v650_v12 }
  0x40   :  { %586 = vmatprep.subr.bf16.mxu1 %v737_v0  ;;  %597 = vmatpush3.bf16.msra.mxu0 %v654_v16 }
  0x41   :  { %598 = vmatprep.subr.bf16.mxu0 %v737_v0 }
  0x43   :  { %587 = vmatpush3.bf16.msra.mxu1 %v651_v13 }
  0x44   :  { %612 = vmatprep.subr.bf16.mxu1 %v737_v0  ;;  %599 = vmatpush3.bf16.msra.mxu0 %v655_v17 }
  0x45   :  { %600 = vmatprep.subr.bf16.mxu0 %v737_v0 }
  0x48   :  { %601 = vmatpush3.bf16.msra.mxu0 %v656_v18 }
  0x49   :  { %602 = vmatprep.subr.bf16.mxu0 %v737_v0 }
  0x4c   :  { %603 = vmatpush3.bf16.msra.mxu0 %v657_v33 }
  0x4d   :  { %604 = vmatprep.subr.bf16.mxu0 %v737_v0 }
  0x50   :  { %605 = vmatpush3.bf16.msra.mxu0 %v658_v34 }
  0x51   :  { %606 = vmatprep.subr.bf16.mxu0 %v737_v0 }
  0x54   :  { %607 = vmatpush3.bf16.msra.mxu0 %v659_v35 }
  0xf6   :  { %v147_v24 = vpop.f32.mrf.mxu0 }
  0xf7   :  { %v148_v26 = vadd.f32 %v147_v24, %v79_v23 }
  0xf8   :  { %v570_v25 = vpop.f32.mrf.mxu0 }
  0xf9   :  { %v154_v30 = vmax.f32 %v148_v26, 0.0 }
  0xfa   :  { %v150_v27 = vpop.f32.mrf.mxu0 }
  0xfb   :  { %v151_v28 = vadd.f32 %v150_v27, %v79_v23 }
  0xfc   :  { %v571_v29 = vpop.f32.mrf.mxu0 }
  0xfd   :  { %v155_v31 = vmax.f32 %v151_v28, 0.0 }
  0xff   :  { %v156_v32 = vpack.c.bf16 %v155_v31, %v154_v30 }
 0x101   :  { %589 = vmatmul.mubr.bf16.vlgmr.msra.gmra.mxu1 %v156_v32 }
 0x102   :  { %628 = vmatprep.mubr.msk.bf16.mxu1 %vm738_vm0, %v737_v0  ;;  %613 = vmatpush3.bf16.msra.mxu1 %v660_v36 }
 0x103   :  { %614 = vmatprep.subr.bf16.mxu1 %v737_v0 }
 0x106   :  { %615 = vmatpush3.bf16.msra.mxu1 %v661_v37 }
 0x107   :  { %616 = vmatprep.subr.bf16.mxu1 %v737_v0 }
 0x10a   :  { %617 = vmatpush3.bf16.msra.mxu1 %v662_v38 }
 0x10b   :  { %618 = vmatprep.subr.bf16.mxu1 %v737_v0 }
 0x10e   :  { %619 = vmatpush3.bf16.msra.mxu1 %v663_v39 }
 0x10f   :  { %620 = vmatprep.subr.bf16.mxu1 %v737_v0 }
 0x112   :  { %621 = vmatpush3.bf16.msra.mxu1 %v664_v40 }
 0x113   :  { %622 = vmatprep.subr.bf16.mxu1 %v737_v0 }
 0x116   :  { %623 = vmatpush3.bf16.msra.mxu1 %v665_v52 }
 0x117   :  { %624 = vmatprep.subr.bf16.mxu1 %v737_v0 }
 0x11a   :  { %625 = vmatpush3.bf16.msra.mxu1 %v666_v53 }
 0x11b   :  { %626 = vmatprep.subr.bf16.mxu1 %v737_v0  ;;  %v400_v0 = vrot.slane %v829_v22, %v399_v3 }
 0x11e   :  { %627 = vmatpush3.bf16.msra.mxu1 %v667_v54 }
 0x1c1   :  { %v259_v43 = vpop.f32.mrf.mxu1 }
 0x1c2   :  { %v260_v45 = vadd.f32 %v259_v43, %v176_v42 }
 0x1c3   :  { %v590_v44 = vpop.f32.mrf.mxu1 }
 0x1c4   :  { %v266_v49 = vmax.f32 %v260_v45, 0.0 }
 0x1c5   :  { %v262_v46 = vpop.f32.mrf.mxu1 }
 0x1c6   :  { %v263_v47 = vadd.f32 %v262_v46, %v176_v42 }
 0x1c7   :  { %v591_v48 = vpop.f32.mrf.mxu1 }
 0x1c8   :  { %v267_v50 = vmax.f32 %v263_v47, 0.0 }
 0x1ca   :  { %v268_v51 = vpack.c.bf16 %v267_v50, %v266_v49 }
 0x1cc   :  { %609 = vmatmul.mubr.bf16.vlgmr.msra.gmra.mxu0 %v268_v51 }
 0x28c   :  { %v371_v57 = vpop.f32.mrf.mxu0 }
 0x28d   :  { %v372_v59 = vadd.f32 %v371_v57, %v288_v56 }
 0x28e   :  { %v610_v58 = vpop.f32.mrf.mxu0 }
 0x28f   :  { %v378_v63 = vmax.f32 %v372_v59, 0.0 }
 0x290   :  { %v374_v60 = vpop.f32.mrf.mxu0 }
 0x291   :  { %v375_v61 = vadd.f32 %v374_v60, %v288_v56 }
 0x292   :  { %v611_v62 = vpop.f32.mrf.mxu0 }
 0x293   :  { %v379_v1 = vmax.f32 %v375_v61, 0.0 }
 0x295   :  { %v380_v2 = vpack.c.bf16 %v379_v1, %v378_v63 }
 0x297   :  { %629 = vmatmul.mubr.bf16.vlgmr.msra.gmra.mxu1 %v380_v2 }
 0x357   :  { %v483_v4 = vpop.f32.mrf.mxu1 }
 0x358   :  { %v484_v5 = vadd.f32 %v483_v4, %v400_v0 }
 0x359   :  { %v630_v6 = vpop.f32.mrf.mxu1 }
 0x35a   :  { %490 = vst [vmem:[%s861_s6] sm:$0xff] %v484_v5 }
 0x35b   :  { %v486_v7 = vpop.f32.mrf.mxu1 }
 0x35c   :  { %v487_v8 = vadd.f32 %v486_v7, %v400_v0 }
 0x35d   :  { %v631_v9 = vpop.f32.mrf.mxu1 }
 0x35e   :  { %491 = vst [vmem:[%s861_s6 + $0x8] sm:$0xff] %v487_v8 }
 0x35f   :  { %496 = vsyncpa [#allocation3], 1 }
 0x360   :  { %497 = vsyncpa [#allocation5], 1 }

</bundles_post_ra>
